<compile_context>
chip_gen: v5e
topology: v5e:2x2
jax: 0.10.0
libtpu: 0.0.40
codegen_flags: <defaults>
</compile_context>

<pallas_src>
import jax
import jax.numpy as jnp
from jax.experimental import pallas as pl
from jax.experimental.pallas import tpu as pltpu


# ----------------------------------------------------------------------------
# Gridless single-call kernel (manual w2 DMA overlapped with layer-1 compute).
# ----------------------------------------------------------------------------
def _fullconnect_kernel(x_ref, w1b1_ref, w2_hbm_ref, b2w3_ref, b3_ref,
                        out_ref, w2_vmem, w2_sem):
    """x_ref: (2B, 2) f32, w1b1: (3,100) f32 [rows 0-1 = w1, row 2 = b1],
    w2_hbm: (100,1000) bf16 in HBM (manual DMA), b2w3: (2,1000) f32
    [row 0 = b2, row 1 = w3], b3: (1,1) f32 in SMEM.  out: (2B, 1) f32."""
    # Kick off the big (200 KB bf16) w2 HBM->VMEM copy first; layer 1 doesn't need it.
    w2_cp = pltpu.make_async_copy(w2_hbm_ref, w2_vmem, w2_sem)
    w2_cp.start()

    # Scalar read before the DMA wait (a .wait() breaks SMEM sst->sld forwarding).
    b3 = b3_ref[0, 0]

    x = x_ref[...]                                      # (2B, 2)
    w1b1 = w1b1_ref[...]                                # (3, 100)

    # ---- Layer 1 (2 -> 100): K=2, two VPU FMAs + bias, hidden under the w2 DMA. ----
    h1 = x[:, 0:1] * w1b1[0:1, :] + x[:, 1:2] * w1b1[1:2, :] + w1b1[2:3, :]
    h1 = jnp.maximum(h1, 0.0)                           # (2B, 100) f32
    h1_bf16 = h1.astype(jnp.bfloat16)

    # ---- Layer 2 (100 -> 1000): the only real MXU matmul (bf16 x bf16 -> f32). ----
    w2_cp.wait()
    b2w3 = b2w3_ref[...]                                # (2, 1000)
    h2 = jnp.dot(h1_bf16, w2_vmem[...], preferred_element_type=jnp.float32)
    h2 = jnp.maximum(h2 + b2w3[0:1, :], 0.0)            # (2B, 1000) f32

    # ---- Layer 3 (1000 -> 1): VPU multiply + XLU lane reduce (no N=1 matmul). ----
    y = jnp.sum(h2 * b2w3[1:2, :], axis=-1, keepdims=True) + b3   # (2B, 1)
    out_ref[...] = y


# ----------------------------------------------------------------------------
# Batched / streaming kernel: grid=(N,), weights VMEM-resident via constant index_map.
# ----------------------------------------------------------------------------
def _fullconnect_batched_kernel(x_ref, w1b1_ref, w2_ref, b2w3_ref, b3_ref, out_ref):
    x = x_ref[...]                                      # (2B, 2)
    w1b1 = w1b1_ref[...]                                # (3, 100)
    h1 = x[:, 0:1] * w1b1[0:1, :] + x[:, 1:2] * w1b1[1:2, :] + w1b1[2:3, :]
    h1 = jnp.maximum(h1, 0.0).astype(jnp.bfloat16)      # (2B, 100)

    b2w3 = b2w3_ref[...]                                # (2, 1000)
    h2 = jnp.dot(h1, w2_ref[...], preferred_element_type=jnp.float32) + b2w3[0:1, :]
    h2 = jnp.maximum(h2, 0.0)                           # (2B, 1000)

    out_ref[...] = (jnp.sum(h2 * b2w3[1:2, :], axis=-1, keepdims=True)
                    + b3_ref[...])                      # (2B, 1)


# ----------------------------------------------------------------------------
# Wrappers
# ----------------------------------------------------------------------------
def pack_params(params):
    """Pre-pack weights once so repeated forward calls pay no per-call packing cost."""
    return {
        "w1b1": jnp.concatenate([params["w1"], params["b1"]], axis=0),   # (3, 100) f32
        "w2_bf16": params["w2"].astype(jnp.bfloat16),                     # (100, 1000) bf16
        "b2w3": jnp.concatenate([params["b2"], params["w3"]], axis=0),    # (2, 1000) f32
        "b3": params["b3"],                                               # (1, 1) f32
    }


def full_connect_forward(x1, x2, packed):
    """Single micro-batch. Returns (out1, out2, out3), each (B, 1) f32."""
    B = x1.shape[0]
    x = jnp.concatenate([x1, x2], axis=0)                # (2B, 2): one input DMA
    y = pl.pallas_call(
        _fullconnect_kernel,
        out_shape=jax.ShapeDtypeStruct((2 * B, 1), jnp.float32),
        in_specs=[
            pl.BlockSpec(memory_space=pltpu.MemorySpace.VMEM),   # x
            pl.BlockSpec(memory_space=pltpu.MemorySpace.VMEM),   # w1 + b1
            pl.BlockSpec(memory_space=pl.ANY),                   # w2 (HBM, manual DMA)
            pl.BlockSpec(memory_space=pltpu.MemorySpace.VMEM),   # b2 + w3
            pl.BlockSpec(memory_space=pltpu.MemorySpace.SMEM),   # b3 scalar
        ],
        out_specs=pl.BlockSpec(memory_space=pltpu.MemorySpace.VMEM),
        scratch_shapes=[
            pltpu.VMEM((100, 1000), jnp.bfloat16),               # w2 landing buffer
            pltpu.SemaphoreType.DMA(()),
        ],
    )(x, packed["w1b1"], packed["w2_bf16"], packed["b2w3"], packed["b3"])
    out1, out2 = y[:B, :], y[B:, :]
    return out1, out2, out1 + out2


def full_connect_forward_many(x1_stack, x2_stack, packed):
    """Stream N micro-batches (N, B, 2) through one pallas_call; weights are DMA'd once
    and stay VMEM-resident across grid steps (constant index_map)."""
    N, B, _ = x1_stack.shape
    x = jnp.concatenate([x1_stack, x2_stack], axis=1)    # (N, 2B, 2)
    y = pl.pallas_call(
        _fullconnect_batched_kernel,
        out_shape=jax.ShapeDtypeStruct((N, 2 * B, 1), jnp.float32),
        grid=(N,),
        in_specs=[
            pl.BlockSpec((None, 2 * B, 2), lambda i: (i, 0, 0)),   # per-step batch
            pl.BlockSpec((3, 100), lambda i: (0, 0)),              # resident
            pl.BlockSpec((100, 1000), lambda i: (0, 0)),           # resident (bf16)
            pl.BlockSpec((2, 1000), lambda i: (0, 0)),             # resident
            pl.BlockSpec((1, 1), lambda i: (0, 0)),                # resident
        ],
        out_specs=pl.BlockSpec((None, 2 * B, 1), lambda i: (i, 0, 0)),
        compiler_params=pltpu.CompilerParams(
            dimension_semantics=("parallel",)),          # lets v7x use both TCs for large N
    )(x, packed["w1b1"], packed["w2_bf16"], packed["b2w3"], packed["b3"])
    out1, out2 = y[:, :B, :], y[:, B:, :]
    return out1, out2, out1 + out2


# ----------------------------------------------------------------------------
# Parameter init (matches nn.Linear shapes/init of FullConnect) + references
# ----------------------------------------------------------------------------
def init_params(key):
    k1, k2, k3, k4, k5, k6 = jax.random.split(key, 6)

    def linear_init(kw, kb, fan_in, fan_out, w_shape):
        bound = 1.0 / jnp.sqrt(jnp.float32(fan_in))      # PyTorch default U(-1/sqrt(in), ..)
        w = jax.random.uniform(kw, w_shape, jnp.float32, -bound, bound)
        b = jax.random.uniform(kb, (1, fan_out), jnp.float32, -bound, bound)
        return w, b

    w1, b1 = linear_init(k1, k2, 2, 100, (2, 100))        # (in, out)
    w2, b2 = linear_init(k3, k4, 100, 1000, (100, 1000))  # (in, out)
    w3, b3 = linear_init(k5, k6, 1000, 1, (1, 1000))      # row vector (out=1, in)
    return {"w1": w1, "b1": b1, "w2": w2, "b2": b2, "w3": w3, "b3": b3}


def _reference(x1, x2, p, w2_dtype=jnp.float32):
    """Pure-JAX reference. w2_dtype=bf16 reproduces the kernel's precision exactly;
    f32 is the original module's semantics (used with a looser tolerance)."""
    w2 = p["w2"].astype(w2_dtype)

    def mlp(x):
        h1 = jnp.maximum(x @ p["w1"] + p["b1"], 0.0)
        h2 = jnp.maximum(
            jnp.dot(h1.astype(w2_dtype), w2, preferred_element_type=jnp.float32)
            + p["b2"], 0.0)
        return jnp.sum(h2 * p["w3"], axis=-1, keepdims=True) + p["b3"]

    y1, y2 = mlp(x1), mlp(x2)
    return y1, y2, y1 + y2


if __name__ == "__main__":
    key = jax.random.PRNGKey(0)
    kp, kx1, kx2, kx3, kx4 = jax.random.split(key, 5)

    B = 8
    params = init_params(kp)
    packed = pack_params(params)

    x1 = jax.random.normal(kx1, (B, 2), jnp.float32)
    x2 = jax.random.normal(kx2, (B, 2), jnp.float32)

    # ---- single-call path ----
    out1, out2, out3 = full_connect_forward(x1, x2, packed)
    jax.block_until_ready((out1, out2, out3))

    m1, m2, m3 = _reference(x1, x2, params, w2_dtype=jnp.bfloat16)   # precision-matched
    f1, f2, f3 = _reference(x1, x2, params, w2_dtype=jnp.float32)    # module semantics
    for o, m, f in ((out1, m1, f1), (out2, m2, f2), (out3, m3, f3)):
        assert jnp.allclose(o, m, atol=1e-3, rtol=1e-3)
        assert jnp.allclose(o, f, atol=5e-2, rtol=5e-2)   # loosened for bf16 w2

    # ---- batched streaming path (weights resident across grid steps) ----
    N = 4
    x1s = jax.random.normal(kx3, (N, B, 2), jnp.float32)
    x2s = jax.random.normal(kx4, (N, B, 2), jnp.float32)
    b1o, b2o, b3o = full_connect_forward_many(x1s, x2s, packed)
    jax.block_until_ready((b1o, b2o, b3o))
    for i in range(N):
        r1, r2, r3 = _reference(x1s[i], x2s[i], params, w2_dtype=jnp.bfloat16)
        assert jnp.allclose(b1o[i], r1, atol=1e-3, rtol=1e-3)
        assert jnp.allclose(b2o[i], r2, atol=1e-3, rtol=1e-3)
        assert jnp.allclose(b3o[i], r3, atol=1e-3, rtol=1e-3)

    print("KERNEL_OK")
</pallas_src>

<mosaic_0001>
module attributes {stable_mosaic.version = 11 : i64} {
  func.func @_fullconnect_kernel(%arg0: memref<16x2xf32, #tpu.memory_space<vmem>>, %arg1: memref<3x100xf32, #tpu.memory_space<vmem>>, %arg2: memref<100x1000xbf16, #tpu.memory_space<any>>, %arg3: memref<2x1000xf32, #tpu.memory_space<vmem>>, %arg4: memref<1x1xf32, #tpu.memory_space<smem>>, %arg5: memref<16x1xf32, #tpu.memory_space<vmem>>, %arg6: memref<100x1000xbf16, #tpu.memory_space<vmem>>, %arg7: memref<!tpu.dma_semaphore, #tpu.memory_space<semaphore_mem>>) attributes {dimension_semantics = [], scalar_prefetch = 0 : i64, scratch_operands = 2 : i64, tpu.core_type = #tpu.core_type<tc>} {
    tpu.enqueue_dma source(%arg2 : memref<100x1000xbf16, #tpu.memory_space<any>>) target(%arg6 : memref<100x1000xbf16, #tpu.memory_space<vmem>>) target_semaphore(%arg7 : memref<!tpu.dma_semaphore, #tpu.memory_space<semaphore_mem>>)
    %c0 = arith.constant 0 : index
    %c0_0 = arith.constant 0 : index
    %0 = memref.load %arg4[%c0, %c0_0] : memref<1x1xf32, #tpu.memory_space<smem>>
    %c0_1 = arith.constant 0 : index
    %c0_2 = arith.constant 0 : index
    %1 = vector.load %arg0[%c0_1, %c0_2] : memref<16x2xf32, #tpu.memory_space<vmem>>, vector<16x2xf32>
    %c0_3 = arith.constant 0 : index
    %c0_4 = arith.constant 0 : index
    %2 = vector.load %arg1[%c0_3, %c0_4] : memref<3x100xf32, #tpu.memory_space<vmem>>, vector<3x100xf32>
    %3 = vector.extract_strided_slice %1 {offsets = [0, 0], sizes = [16, 1], strides = [1, 1]} : vector<16x2xf32> to vector<16x1xf32>
    %4 = vector.extract_strided_slice %2 {offsets = [0, 0], sizes = [1, 100], strides = [1, 1]} : vector<3x100xf32> to vector<1x100xf32>
    %5 = vector.broadcast %3 : vector<16x1xf32> to vector<16x100xf32>
    %6 = vector.broadcast %4 : vector<1x100xf32> to vector<16x100xf32>
    %7 = arith.mulf %5, %6 : vector<16x100xf32>
    %8 = vector.extract_strided_slice %1 {offsets = [0, 1], sizes = [16, 1], strides = [1, 1]} : vector<16x2xf32> to vector<16x1xf32>
    %9 = vector.extract_strided_slice %2 {offsets = [1, 0], sizes = [1, 100], strides = [1, 1]} : vector<3x100xf32> to vector<1x100xf32>
    %10 = vector.broadcast %8 : vector<16x1xf32> to vector<16x100xf32>
    %11 = vector.broadcast %9 : vector<1x100xf32> to vector<16x100xf32>
    %12 = arith.mulf %10, %11 : vector<16x100xf32>
    %13 = arith.addf %7, %12 : vector<16x100xf32>
    %14 = vector.extract_strided_slice %2 {offsets = [2, 0], sizes = [1, 100], strides = [1, 1]} : vector<3x100xf32> to vector<1x100xf32>
    %15 = vector.broadcast %14 : vector<1x100xf32> to vector<16x100xf32>
    %16 = arith.addf %13, %15 : vector<16x100xf32>
    %cst = arith.constant 0.000000e+00 : f32
    %17 = vector.broadcast %cst : f32 to vector<16x100xf32>
    %18 = arith.maximumf %16, %17 : vector<16x100xf32>
    %19 = arith.truncf %18 : vector<16x100xf32> to vector<16x100xbf16>
    tpu.wait_dma2 semaphore(%arg7 : memref<!tpu.dma_semaphore, #tpu.memory_space<semaphore_mem>>) src(%arg2 : memref<100x1000xbf16, #tpu.memory_space<any>>) dst(%arg6 : memref<100x1000xbf16, #tpu.memory_space<vmem>>)
    %c0_5 = arith.constant 0 : index
    %c0_6 = arith.constant 0 : index
    %20 = vector.load %arg3[%c0_5, %c0_6] : memref<2x1000xf32, #tpu.memory_space<vmem>>, vector<2x1000xf32>
    %c0_7 = arith.constant 0 : index
    %c0_8 = arith.constant 0 : index
    %21 = vector.load %arg6[%c0_7, %c0_8] : memref<100x1000xbf16, #tpu.memory_space<vmem>>, vector<100x1000xbf16>
    %cst_9 = arith.constant dense<0.000000e+00> : vector<16x1000xf32>
    %22 = tpu.matmul %19, %21, %cst_9 {dimension_numbers = #tpu.dot_dimension_numbers<[1], [0], [0], [1], [0, 0, 1, 1], [], []>} : vector<16x100xbf16>, vector<100x1000xbf16>, vector<16x1000xf32> -> vector<16x1000xf32>
    %23 = vector.extract_strided_slice %20 {offsets = [0, 0], sizes = [1, 1000], strides = [1, 1]} : vector<2x1000xf32> to vector<1x1000xf32>
    %24 = vector.broadcast %23 : vector<1x1000xf32> to vector<16x1000xf32>
    %25 = arith.addf %22, %24 : vector<16x1000xf32>
    %cst_10 = arith.constant 0.000000e+00 : f32
    %26 = vector.broadcast %cst_10 : f32 to vector<16x1000xf32>
    %27 = arith.maximumf %25, %26 : vector<16x1000xf32>
    %28 = vector.extract_strided_slice %20 {offsets = [1, 0], sizes = [1, 1000], strides = [1, 1]} : vector<2x1000xf32> to vector<1x1000xf32>
    %29 = vector.broadcast %28 : vector<1x1000xf32> to vector<16x1000xf32>
    %30 = arith.mulf %27, %29 : vector<16x1000xf32>
    %cst_11 = arith.constant dense<0.000000e+00> : vector<16xf32>
    %31 = vector.multi_reduction <add>, %30, %cst_11 [1] : vector<16x1000xf32> to vector<16xf32>
    %32 = vector.shape_cast %31 : vector<16xf32> to vector<16x1xf32>
    %33 = vector.broadcast %0 : f32 to vector<16x1xf32>
    %34 = arith.addf %32, %33 : vector<16x1xf32>
    %c0_12 = arith.constant 0 : index
    %c0_13 = arith.constant 0 : index
    %35 = vector.load %arg5[%c0_12, %c0_13] : memref<16x1xf32, #tpu.memory_space<vmem>>, vector<16x1xf32>
    tpu.vector_store %arg5[%c0_12, %c0_13], %34 {strides = array<i32>} : memref<16x1xf32, #tpu.memory_space<vmem>>, vector<16x1xf32>,
    return
  }
}

</mosaic_0001>

<bundles_post_ra>
// kernel: tpu_custom_call.1
= control target key start
LH: loop header
LB: loop body
LE: loop exit
PB: predicated region body
PF: predicated region fallthrough
CT: control target
= control target key end

     0   :  { %11 = vsyncpa [#allocation6], 0  ;;  %s970_s21 = smov [#allocation5]   ;;  %s1059_s0 = inlined_call_operand.vmem [shape: f32[16,2], index: 0, kind: input, shape index: {}]   ;;  %s1060_s1 = inlined_call_operand.hbm [shape: f32[3,100], index: 1, kind: input, shape index: {}]   ;;  %s1061_s2 = inlined_call_operand.hbm [shape: bf16[100,1000], index: 2, kind: input, shape index: {}]   ;;  %s1062_s3 = inlined_call_operand.vmem [shape: f32[2,1000], index: 3, kind: input, shape index: {}]   ;;  %s1063_s4 = inlined_call_operand.<no memory space> [shape: f32[1,1], index: 4, kind: input, shape index: {}]   ;;  %s1064_s5 = inlined_call_operand.vmem [shape: f32[16,1], index: 5, kind: output, shape index: {}]  }
   0x1   :  { %s19_s20 = sshll.u32 %s1060_s1, 4  ;;  %s21_s22 = sshll.u32 %s970_s21, 4  ;;  %s20_s20 = int_to_ptr.hbm [resolvable:$true] %s19_s20  ;;  %s22_s22 = int_to_ptr.vmem [resolvable:$true] %s21_s22 }
   0x2   :  { %24 = dma.hbm_to_vmem [thread:$0]  %s20_s20, 64, %s22_s22, [#allocation6]  }
   0x3   :  { %966 = dma.done.wait [#allocation6], 64  }
   0x4   :  { %967 = vsyncadd [#allocation6], 4294967232  ;;  %v971_v0 = vmov 1   ;;  %v972_v1 = vmov 0   ;;  %v48_v2 = vld [vmem:[%s1059_s0] sm:$0xff]  ;;  %s41_s1 = sshll.u32 %s1061_s2, 4  ;;  %s42_s1 = int_to_ptr.hbm [resolvable:$true] %s41_s1 }
   0x5   :  { %916 = vset.pattern.permute.xlu1 %v971_v0  ;;  %915 = vset.pattern.permute.xlu0 %v972_v1  ;;  %s973_s27 = smov [#allocation2]   ;;  %v49_v3 = vld [vmem:[%s1059_s0 + $0x8] sm:$0xff]  ;;  %v50_v4 = vld [vmem:[#allocation5] sm:$0x7] }
   0x6   :  { %65 = vperm.xlu1 %916, %v48_v2   ;;  %53 = vperm.xlu0 %915, %v48_v2   ;;  %s43_s28 = sshll.u32 %s973_s27, 4  ;;  %v72_v5 = vperm.slane %v50_v4, 1  ;;  %v61_v6 = vperm.slane %v50_v4, 0  ;;  %v77_v11 = vperm.slane %v50_v4, 2  ;;  %s44_s28 = int_to_ptr.vmem [resolvable:$true] %s43_s28 }
   0x7   :  { %46 = dma.hbm_to_vmem [thread:$0]  %s42_s1, 6656, %s44_s28, [#allocation3] }
   0xe   :  { %69 = vperm.xlu1 %916, %v49_v3   ;;  %58 = vperm.xlu0 %915, %v49_v3  }
  0x16   :  { %917 = vset.pattern.permute.xlu0 %v971_v0 }
  0x78   :  { %v66_v7 = vpop.permute.xlu1 %65  ;;  %v54_v8 = vpop.permute.xlu0 %53 }
  0x79   :  { %v73_v9 = vmul.f32 %v72_v5, %v66_v7  ;;  %v62_v10 = vmul.f32 %v61_v6, %v54_v8 }
  0x7b   :  { %v75_v12 = vadd.f32 %v73_v9, %v62_v10 }
  0x7d   :  { %v78_v17 = vadd.f32 %v77_v11, %v75_v12 }
  0x7f   :  { %v80_v20 = vmax.f32 %v78_v17, 0.0 }
  0x80   :  { %v70_v13 = vpop.permute.xlu1 %69  ;;  %v59_v14 = vpop.permute.xlu0 %58 }
  0x81   :  { %v74_v15 = vmul.f32 %v72_v5, %v70_v13  ;;  %v63_v16 = vmul.f32 %v61_v6, %v59_v14 }
  0x83   :  { %v76_v18 = vadd.f32 %v74_v15, %v63_v16 }
  0x85   :  { %v79_v19 = vadd.f32 %v77_v11, %v76_v18 }
  0x87   :  { %v81_v21 = vmax.f32 %v79_v19, 0.0 }
  0x89   :  { %v1016_v22 = vpack.c.bf16 %v81_v21, %v80_v20 }
  0x8a   :  { %968 = dma.done.wait [#allocation3], 6656 }
  0x8b   :  { %969 = vsyncadd [#allocation3], 4294960640  ;;  %v137_v23 = vld [vmem:[#allocation2 + $0x180] sm:$0x33]  ;;  %v138_v24 = vld [vmem:[#allocation2 + $0x188] sm:$0x33] }
  0x8c   :  { %v315_v25 = vunpack.c.l.b16 %v137_v23  ;;  %v316_v26 = vunpack.c.h.b16 %v137_v23  ;;  %v317_v27 = vunpack.c.l.b16 %v138_v24  ;;  %v318_v28 = vunpack.c.h.b16 %v138_v24  ;;  %v824_v29 = vld [vmem:[#allocation2 + $0x140] sm:$0xf]  ;;  %v903_v35 = vld [vmem:[#allocation2 + $0x144] sm:$0xf]  ;;  %v832_v37 = vld [vmem:[#allocation2 + $0x148] sm:$0xf] }
  0x8d   :  { %vm431_vm0 = vcmask 1041408   ;;  %v907_v30 = vld [vmem:[#allocation2 + $0x15c] sm:$0xf0]  ;;  %v826_v36 = vld [vmem:[#allocation2 + $0x160] sm:$0xf0]  ;;  %vm427_vm1 = vcmask 818176  }
  0x8e   :  { %v371_v31 = vpack.c.b16 %v315_v25, %v315_v25  ;;  %v372_v32 = vpack.c.b16 %v316_v26, %v316_v26  ;;  %v373_v33 = vpack.c.b16 %v317_v27, %v317_v27  ;;  %v374_v34 = vpack.c.b16 %v318_v28, %v318_v28  ;;  %v908_v38 = vld [vmem:[#allocation2 + $0x164] sm:$0xf0]  ;;  %v904_v39 = vld [vmem:[#allocation2 + $0x14c] sm:$0xf]  ;;  %v792_v47 = vld [vmem:[#allocation2 + $0x100] sm:$0xf] }
  0x8f   :  { %v834_v40 = vld [vmem:[#allocation2 + $0x168] sm:$0xf0]  ;;  %v825_v45 = vor.u32 %v907_v30, %v824_v29  ;;  %v829_v46 = vor.u32 %v903_v35, %v826_v36  ;;  %v899_v48 = vld [vmem:[#allocation2 + $0x11c] sm:$0xf0]  ;;  %v833_v49 = vor.u32 %v908_v38, %v832_v37  ;;  %v895_v51 = vld [vmem:[#allocation2 + $0x104] sm:$0xf] }
  0x90   :  { %v433_v41 = vsel %vm431_vm0, %v371_v31, 0  ;;  %v436_v42 = vsel %vm431_vm0, %v372_v32, 0  ;;  %v439_v43 = vsel %vm431_vm0, %v373_v33, 0  ;;  %v442_v44 = vsel %vm431_vm0, %v374_v34, 0  ;;  %v794_v52 = vld [vmem:[#allocation2 + $0x120] sm:$0xf0] }
  0x91   :  { %457 = vmatpush.bf16.msra.mxu0 %v433_v41  ;;  %471 = vmatpush.bf16.msra.mxu1 %v436_v42  ;;  %v837_v50 = vor.u32 %v904_v39, %v834_v40  ;;  %v800_v53 = vld [vmem:[#allocation2 + $0x108] sm:$0xf]  ;;  %v896_v55 = vld [vmem:[#allocation2 + $0x10c] sm:$0xf]  ;;  %v793_v57 = vor.u32 %v899_v48, %v792_v47  ;;  %v797_v58 = vor.u32 %v895_v51, %v794_v52  ;;  %v760_v59 = vld [vmem:[#allocation2 + $0xc0] sm:$0xf] }
  0x92   :  { %485 = vmatpush.bf16.msra.mxu2 %v439_v43  ;;  %499 = vmatpush.bf16.msra.mxu3 %v442_v44  ;;  %v900_v54 = vld [vmem:[#allocation2 + $0x124] sm:$0xf0]  ;;  %v802_v56 = vld [vmem:[#allocation2 + $0x128] sm:$0xf0]  ;;  %v891_v60 = vld [vmem:[#allocation2 + $0xdc] sm:$0xf0] }
  0x93   :  { %v801_v61 = vor.u32 %v900_v54, %v800_v53  ;;  %v805_v62 = vor.u32 %v896_v55, %v802_v56  ;;  %v887_v63 = vld [vmem:[#allocation2 + $0xc4] sm:$0xf]  ;;  %v768_v1 = vld [vmem:[#allocation2 + $0xc8] sm:$0xf]  ;;  %v888_v3 = vld [vmem:[#allocation2 + $0xcc] sm:$0xf]  ;;  %v761_v5 = vor.u32 %v891_v60, %v760_v59 }
  0x94   :  { %v762_v0 = vld [vmem:[#allocation2 + $0xe0] sm:$0xf0]  ;;  %v892_v2 = vld [vmem:[#allocation2 + $0xe4] sm:$0xf0]  ;;  %v770_v4 = vld [vmem:[#allocation2 + $0xe8] sm:$0xf0] }
  0x95   :  { %458 = vmatpush.bf16.msra.mxu0 %v825_v45  ;;  %472 = vmatpush.bf16.msra.mxu1 %v829_v46  ;;  %v765_v6 = vor.u32 %v887_v63, %v762_v0  ;;  %v728_v7 = vld [vmem:[#allocation2 + $0x80] sm:$0xf]  ;;  %v769_v9 = vor.u32 %v892_v2, %v768_v1  ;;  %v773_v10 = vor.u32 %v888_v3, %v770_v4  ;;  %v879_v11 = vld [vmem:[#allocation2 + $0x84] sm:$0xf]  ;;  %v736_v13 = vld [vmem:[#allocation2 + $0x88] sm:$0xf] }
  0x96   :  { %486 = vmatpush.bf16.msra.mxu2 %v833_v49  ;;  %500 = vmatpush.bf16.msra.mxu3 %v837_v50  ;;  %v883_v8 = vld [vmem:[#allocation2 + $0x9c] sm:$0xf0]  ;;  %v730_v12 = vld [vmem:[#allocation2 + $0xa0] sm:$0xf0]  ;;  %v884_v14 = vld [vmem:[#allocation2 + $0xa4] sm:$0xf0] }
  0x97   :  { %v880_v15 = vld [vmem:[#allocation2 + $0x8c] sm:$0xf]  ;;  %v696_v17 = vld [vmem:[#allocation2 + $0x40] sm:$0xf]  ;;  %v729_v18 = vor.u32 %v883_v8, %v728_v7  ;;  %v733_v19 = vor.u32 %v879_v11, %v730_v12  ;;  %v871_v21 = vld [vmem:[#allocation2 + $0x44] sm:$0xf]  ;;  %v737_v24 = vor.u32 %v884_v14, %v736_v13 }
  0x98   :  { %v738_v16 = vld [vmem:[#allocation2 + $0xa8] sm:$0xf0]  ;;  %v875_v20 = vld [vmem:[#allocation2 + $0x5c] sm:$0xf0]  ;;  %v139_v23 = vld [vmem:[#allocation2 + $0x190] sm:$0x33] }
  0x99   :  { %459 = vmatpush.bf16.msra.mxu0 %v793_v57  ;;  %473 = vmatpush.bf16.msra.mxu1 %v797_v58  ;;  %v741_v25 = vor.u32 %v880_v15, %v738_v16  ;;  %v698_v26 = vld [vmem:[#allocation2 + $0x60] sm:$0xf0]  ;;  %v704_v27 = vld [vmem:[#allocation2 + $0x48] sm:$0xf]  ;;  %v140_v28 = vld [vmem:[#allocation2 + $0x198] sm:$0x33]  ;;  %v319_v32 = vunpack.c.l.b16 %v139_v23  ;;  %v320_v33 = vunpack.c.h.b16 %v139_v23  ;;  %v697_v34 = vor.u32 %v875_v20, %v696_v17 }
  0x9a   :  { %487 = vmatpush.bf16.msra.mxu2 %v801_v61  ;;  %501 = vmatpush.bf16.msra.mxu3 %v805_v62  ;;  %v876_v29 = vld [vmem:[#allocation2 + $0x64] sm:$0xf0]  ;;  %v872_v30 = vld [vmem:[#allocation2 + $0x4c] sm:$0xf]  ;;  %v701_v35 = vor.u32 %v871_v21, %v698_v26  ;;  %v664_v36 = vld [vmem:[#allocation2] sm:$0xf]  ;;  %v321_v38 = vunpack.c.l.b16 %v140_v28  ;;  %v322_v39 = vunpack.c.h.b16 %v140_v28 }
  0x9b   :  { %v706_v31 = vld [vmem:[#allocation2 + $0x68] sm:$0xf0]  ;;  %v867_v37 = vld [vmem:[#allocation2 + $0x1c] sm:$0xf0]  ;;  %v705_v40 = vor.u32 %v876_v29, %v704_v27  ;;  %v863_v42 = vld [vmem:[#allocation2 + $0x4] sm:$0xf]  ;;  %v375_v49 = vpack.c.b16 %v319_v32, %v319_v32  ;;  %v376_v50 = vpack.c.b16 %v320_v33, %v320_v33 }
  0x9c   :  { %v709_v41 = vor.u32 %v872_v30, %v706_v31  ;;  %v666_v43 = vld [vmem:[#allocation2 + $0x20] sm:$0xf0]  ;;  %v672_v44 = vld [vmem:[#allocation2 + $0x8] sm:$0xf]  ;;  %v864_v46 = vld [vmem:[#allocation2 + $0xc] sm:$0xf]  ;;  %v665_v48 = vor.u32 %v867_v37, %v664_v36  ;;  %v377_v52 = vpack.c.b16 %v321_v38, %v321_v38  ;;  %v378_v53 = vpack.c.b16 %v322_v39, %v322_v39 }
  0x9d   :  { %460 = vmatpush.bf16.msra.mxu0 %v761_v5  ;;  %474 = vmatpush.bf16.msra.mxu1 %v765_v6  ;;  %v868_v45 = vld [vmem:[#allocation2 + $0x24] sm:$0xf0]  ;;  %v674_v47 = vld [vmem:[#allocation2 + $0x28] sm:$0xf0]  ;;  %v669_v51 = vor.u32 %v863_v42, %v666_v43  ;;  %v840_v56 = vld [vmem:[#allocation2 + $0x150] sm:$0xf] }
  0x9e   :  { %488 = vmatpush.bf16.msra.mxu2 %v769_v9  ;;  %502 = vmatpush.bf16.msra.mxu3 %v773_v10  ;;  %v673_v54 = vor.u32 %v868_v45, %v672_v44  ;;  %v677_v55 = vor.u32 %v864_v46, %v674_v47  ;;  %v909_v57 = vld [vmem:[#allocation2 + $0x16c] sm:$0xf0]  ;;  %v905_v58 = vld [vmem:[#allocation2 + $0x154] sm:$0xf]  ;;  %v445_v60 = vsel %vm431_vm0, %v375_v49, 0  ;;  %v448_v61 = vsel %vm431_vm0, %v376_v50, 0 }
  0x9f   :  { %v842_v59 = vld [vmem:[#allocation2 + $0x170] sm:$0xf0]  ;;  %v848_v62 = vld [vmem:[#allocation2 + $0x158] sm:$0xf]  ;;  %v451_v0 = vsel %vm431_vm0, %v377_v52, 0  ;;  %v454_v1 = vsel %vm431_vm0, %v378_v53, 0  ;;  %v841_v4 = vor.u32 %v909_v57, %v840_v56 }
  0xa0   :  { %v910_v63 = vld [vmem:[#allocation2 + $0x174] sm:$0xf0]  ;;  %v906_v2 = vld [vmem:[#allocation2 + $0x15c] sm:$0xf]  ;;  %v845_v5 = vor.u32 %v905_v58, %v842_v59  ;;  %v808_v6 = vld [vmem:[#allocation2 + $0x110] sm:$0xf] }
  0xa1   :  { %461 = vmatpush.bf16.msra.mxu0 %v729_v18  ;;  %475 = vmatpush.bf16.msra.mxu1 %v733_v19  ;;  %v850_v3 = vld [vmem:[#allocation2 + $0x178] sm:$0xf0]  ;;  %v901_v7 = vld [vmem:[#allocation2 + $0x12c] sm:$0xf0]  ;;  %v849_v8 = vor.u32 %v910_v63, %v848_v62  ;;  %v897_v10 = vld [vmem:[#allocation2 + $0x114] sm:$0xf] }
  0xa2   :  { %489 = vmatpush.bf16.msra.mxu2 %v737_v24  ;;  %503 = vmatpush.bf16.msra.mxu3 %v741_v25  ;;  %v853_v9 = vor.u32 %v906_v2, %v850_v3  ;;  %v810_v11 = vld [vmem:[#allocation2 + $0x130] sm:$0xf0]  ;;  %v816_v12 = vld [vmem:[#allocation2 + $0x118] sm:$0xf]  ;;  %v898_v14 = vld [vmem:[#allocation2 + $0x11c] sm:$0xf]  ;;  %v809_v16 = vor.u32 %v901_v7, %v808_v6 }
  0xa3   :  { %v902_v13 = vld [vmem:[#allocation2 + $0x134] sm:$0xf0]  ;;  %v818_v15 = vld [vmem:[#allocation2 + $0x138] sm:$0xf0]  ;;  %v813_v17 = vor.u32 %v897_v10, %v810_v11  ;;  %v776_v18 = vld [vmem:[#allocation2 + $0xd0] sm:$0xf] }
  0xa4   :  { %v893_v19 = vld [vmem:[#allocation2 + $0xec] sm:$0xf0]  ;;  %v817_v20 = vor.u32 %v902_v13, %v816_v12  ;;  %v821_v21 = vor.u32 %v898_v14, %v818_v15  ;;  %v889_v23 = vld [vmem:[#allocation2 + $0xd4] sm:$0xf]  ;;  %v784_v25 = vld [vmem:[#allocation2 + $0xd8] sm:$0xf] }
  0xa5   :  { %462 = vmatpush.bf16.msra.mxu0 %v697_v34  ;;  %476 = vmatpush.bf16.msra.mxu1 %v701_v35  ;;  %v778_v24 = vld [vmem:[#allocation2 + $0xf0] sm:$0xf0]  ;;  %v894_v26 = vld [vmem:[#allocation2 + $0xf4] sm:$0xf0]  ;;  %v890_v27 = vld [vmem:[#allocation2 + $0xdc] sm:$0xf]  ;;  %v777_v29 = vor.u32 %v893_v19, %v776_v18 }
  0xa6   :  { %490 = vmatpush.bf16.msra.mxu2 %v705_v40  ;;  %504 = vmatpush.bf16.msra.mxu3 %v709_v41  ;;  %v786_v28 = vld [vmem:[#allocation2 + $0xf8] sm:$0xf0]  ;;  %v781_v30 = vor.u32 %v889_v23, %v778_v24  ;;  %v744_v31 = vld [vmem:[#allocation2 + $0x90] sm:$0xf]  ;;  %v785_v33 = vor.u32 %v894_v26, %v784_v25  ;;  %v881_v35 = vld [vmem:[#allocation2 + $0x94] sm:$0xf] }
  0xa7   :  { %v885_v32 = vld [vmem:[#allocation2 + $0xac] sm:$0xf0]  ;;  %v789_v34 = vor.u32 %v890_v27, %v786_v28  ;;  %v746_v36 = vld [vmem:[#allocation2 + $0xb0] sm:$0xf0]  ;;  %v752_v37 = vld [vmem:[#allocation2 + $0x98] sm:$0xf] }
  0xa8   :  { %v886_v38 = vld [vmem:[#allocation2 + $0xb4] sm:$0xf0]  ;;  %v882_v39 = vld [vmem:[#allocation2 + $0x9c] sm:$0xf]  ;;  %v745_v41 = vor.u32 %v885_v32, %v744_v31  ;;  %v749_v42 = vor.u32 %v881_v35, %v746_v36  ;;  %v712_v43 = vld [vmem:[#allocation2 + $0x50] sm:$0xf] }
  0xa9   :  { %463 = vmatpush.bf16.msra.mxu0 %v665_v48  ;;  %477 = vmatpush.bf16.msra.mxu1 %v669_v51  ;;  %v754_v40 = vld [vmem:[#allocation2 + $0xb8] sm:$0xf0]  ;;  %v877_v44 = vld [vmem:[#allocation2 + $0x6c] sm:$0xf0]  ;;  %v753_v45 = vor.u32 %v886_v38, %v752_v37  ;;  %v873_v47 = vld [vmem:[#allocation2 + $0x54] sm:$0xf] }
  0xaa   :  { %491 = vmatpush.bf16.msra.mxu2 %v673_v54  ;;  %505 = vmatpush.bf16.msra.mxu3 %v677_v55  ;;  %v757_v46 = vor.u32 %v882_v39, %v754_v40  ;;  %v714_v48 = vld [vmem:[#allocation2 + $0x70] sm:$0xf0]  ;;  %v720_v49 = vld [vmem:[#allocation2 + $0x58] sm:$0xf]  ;;  %v874_v51 = vld [vmem:[#allocation2 + $0x5c] sm:$0xf]  ;;  %v713_v53 = vor.u32 %v877_v44, %v712_v43 }
  0xab   :  { %v878_v50 = vld [vmem:[#allocation2 + $0x74] sm:$0xf0]  ;;  %v722_v52 = vld [vmem:[#allocation2 + $0x78] sm:$0xf0]  ;;  %v717_v54 = vor.u32 %v873_v47, %v714_v48  ;;  %v680_v55 = vld [vmem:[#allocation2 + $0x10] sm:$0xf] }
  0xac   :  { %854 = vmatmul.msk.bf16.vlgmr.msra.gmra.mxu0 %vm427_vm1, %v1016_v22  ;;  %855 = vmatmul.msk.bf16.vlgmr.msra.gmra.mxu1 %vm427_vm1, %v1016_v22  ;;  %v869_v56 = vld [vmem:[#allocation2 + $0x2c] sm:$0xf0]  ;;  %v721_v57 = vor.u32 %v878_v50, %v720_v49  ;;  %v725_v58 = vor.u32 %v874_v51, %v722_v52  ;;  %v865_v59 = vld [vmem:[#allocation2 + $0x14] sm:$0xf]  ;;  %v870_v62 = vld [vmem:[#allocation2 + $0x34] sm:$0xf0] }
  0xad   :  { %513 = vmatpush.bf16.msrb.mxu0 %v445_v60  ;;  %527 = vmatpush.bf16.msrb.mxu1 %v448_v61  ;;  %v682_v60 = vld [vmem:[#allocation2 + $0x30] sm:$0xf0]  ;;  %v688_v61 = vld [vmem:[#allocation2 + $0x18] sm:$0xf]  ;;  %v866_v63 = vld [vmem:[#allocation2 + $0x1c] sm:$0xf] }
  0xae   :  { %541 = vmatpush.bf16.msrb.mxu2 %v451_v0  ;;  %555 = vmatpush.bf16.msrb.mxu3 %v454_v1  ;;  %v690_v0 = vld [vmem:[#allocation2 + $0x38] sm:$0xf0]  ;;  %v681_v1 = vor.u32 %v869_v56, %v680_v55  ;;  %v685_v2 = vor.u32 %v865_v59, %v682_v60  ;;  %v689_v3 = vor.u32 %v870_v62, %v688_v61  ;;  %v88_v26 = vld [vmem:[%s1062_s3 + $0x8] sm:$0xff]  ;;  %vm630_vm2 = vcmask 850944  }
  0xaf   :  { %856 = vmatmul.msk.bf16.vlgmr.msra.gmra.mxu2 %vm427_vm1, %v1016_v22  ;;  %857 = vmatmul.msk.bf16.vlgmr.msra.gmra.mxu3 %vm427_vm1, %v1016_v22  ;;  %v147_v32 = vperm.slane %v88_v26, 0  ;;  %v148_v36 = vperm.slane %v88_v26, 2  ;;  %v588_v43 = vperm.slane %v88_v26, 1  ;;  %v589_v56 = vperm.slane %v88_v26, 3 }
  0xb0   :  { %vm648_vm3 = vcmask 7168  }
  0xb1   :  { %514 = vmatpush.bf16.msrb.mxu0 %v841_v4  ;;  %528 = vmatpush.bf16.msrb.mxu1 %v845_v5  ;;  %v693_v4 = vor.u32 %v866_v63, %v690_v0  ;;  %v87_v5 = vld [vmem:[%s1062_s3] sm:$0xff]  ;;  %v164_v47 = vperm.slane %v148_v36, 0 }
  0xb2   :  { %542 = vmatpush.bf16.msrb.mxu2 %v849_v8  ;;  %556 = vmatpush.bf16.msrb.mxu3 %v853_v9  ;;  %v143_v6 = vperm.slane %v87_v5, 0  ;;  %v144_v7 = vperm.slane %v87_v5, 2  ;;  %v145_v12 = vperm.slane %v87_v5, 4  ;;  %v584_v13 = vperm.slane %v87_v5, 1 }
  0xb3   :  { %v146_v18 = vperm.slane %v87_v5, 6  ;;  %v586_v28 = vperm.slane %v87_v5, 5  ;;  %v587_v31 = vperm.slane %v87_v5, 7 }
  0xb4   :  { %v159_v8 = vperm.slane %v143_v6, 0  ;;  %v160_v10 = vperm.slane %v144_v7, 0  ;;  %v161_v19 = vperm.slane %v145_v12, 0  ;;  %v605_v7 = vperm.slane %v589_v56, 1 }
  0xb5   :  { %515 = vmatpush.bf16.msrb.mxu0 %v809_v16  ;;  %529 = vmatpush.bf16.msrb.mxu1 %v813_v17  ;;  %v585_v16 = vperm.slane %v87_v5, 3  ;;  %v162_v25 = vperm.slane %v146_v18, 0  ;;  %v602_v38 = vperm.slane %v586_v28, 1  ;;  %v591_v5 = vperm.slane %v88_v26, 7 }
  0xb6   :  { %543 = vmatpush.bf16.msrb.mxu2 %v817_v20  ;;  %557 = vmatpush.bf16.msrb.mxu3 %v821_v21  ;;  %v600_v20 = vperm.slane %v584_v13, 1 }
  0xb7   :  { %v601_v24 = vperm.slane %v585_v16, 1  ;;  %v607_v18 = vperm.slane %v591_v5, 1 }
  0xb9   :  { %516 = vmatpush.bf16.msrb.mxu0 %v777_v29  ;;  %530 = vmatpush.bf16.msrb.mxu1 %v781_v30 }
  0xba   :  { %544 = vmatpush.bf16.msrb.mxu2 %v785_v33  ;;  %558 = vmatpush.bf16.msrb.mxu3 %v789_v34 }
  0xbd   :  { %517 = vmatpush.bf16.msrb.mxu0 %v745_v41  ;;  %531 = vmatpush.bf16.msrb.mxu1 %v749_v42  ;;  %v603_v42 = vperm.slane %v587_v31, 1 }
  0xbe   :  { %545 = vmatpush.bf16.msrb.mxu2 %v753_v45  ;;  %559 = vmatpush.bf16.msrb.mxu3 %v757_v46  ;;  %v163_v46 = vperm.slane %v147_v32, 0 }
  0xc1   :  { %518 = vmatpush.bf16.msrb.mxu0 %v713_v53  ;;  %532 = vmatpush.bf16.msrb.mxu1 %v717_v54  ;;  %v604_v54 = vperm.slane %v588_v43, 1 }
  0xc2   :  { %546 = vmatpush.bf16.msrb.mxu2 %v721_v57  ;;  %560 = vmatpush.bf16.msrb.mxu3 %v725_v58  ;;  %v149_v57 = vperm.slane %v88_v26, 4  ;;  %v150_v58 = vperm.slane %v88_v26, 6 }
  0xc5   :  { %519 = vmatpush.bf16.msrb.mxu0 %v681_v1  ;;  %533 = vmatpush.bf16.msrb.mxu1 %v685_v2 }
  0xc6   :  { %547 = vmatpush.bf16.msrb.mxu2 %v689_v3  ;;  %561 = vmatpush.bf16.msrb.mxu3 %v693_v4  ;;  %v590_v4 = vperm.slane %v88_v26, 5 }
  0xc8   :  { %858 = vmatmul.msk.bf16.vlgmr.msrb.gmra.mxu0 %vm427_vm1, %v1016_v22  ;;  %859 = vmatmul.msk.bf16.vlgmr.msrb.gmra.mxu1 %vm427_vm1, %v1016_v22  ;;  %v606_v16 = vperm.slane %v590_v4, 1 }
  0xc9   :  { %860 = vmatmul.msk.bf16.vlgmr.msrb.gmra.mxu2 %vm427_vm1, %v1016_v22  ;;  %861 = vmatmul.msk.bf16.vlgmr.msrb.gmra.mxu3 %vm427_vm1, %v1016_v22 }
 0x129   :  { %v465_v9 = vpop.f32.mrf.mxu0  ;;  %v479_v11 = vpop.f32.mrf.mxu1 }
 0x12a   :  { %v466_v14 = vadd.f32 %v465_v9, %v159_v8  ;;  %v480_v15 = vadd.f32 %v479_v11, %v160_v10  ;;  %v166_v9 = vperm.slane %v150_v58, 0 }
 0x12c   :  { %v568_v21 = vmax.f32 %v466_v14, 0.0  ;;  %v569_v23 = vmax.f32 %v480_v15, 0.0 }
 0x12e   :  { %v608_v33 = vmul.f32 %v600_v20, %v568_v21  ;;  %v609_v34 = vmul.f32 %v601_v24, %v569_v23 }
 0x130   :  { %v624_v44 = vadd.f32 %v609_v34, %v608_v33 }
 0x131   :  { %v467_v29 = vpop.f32.mrf.mxu0  ;;  %v481_v30 = vpop.f32.mrf.mxu1 }
 0x132   :  { %v493_v17 = vpop.f32.mrf.mxu2  ;;  %v507_v22 = vpop.f32.mrf.mxu3  ;;  %v468_v39 = vadd.f32 %v467_v29, %v159_v8  ;;  %v482_v40 = vadd.f32 %v481_v30, %v160_v10  ;;  %v165_v8 = vperm.slane %v149_v57, 0 }
 0x133   :  { %v494_v27 = vadd.f32 %v493_v17, %v161_v19  ;;  %v508_v35 = vadd.f32 %v507_v22, %v162_v25 }
 0x134   :  { %v576_v49 = vmax.f32 %v468_v39, 0.0  ;;  %v577_v50 = vmax.f32 %v482_v40, 0.0 }
 0x135   :  { %v570_v37 = vmax.f32 %v494_v27, 0.0  ;;  %v571_v45 = vmax.f32 %v508_v35, 0.0 }
 0x136   :  { %v616_v0 = vmul.f32 %v600_v20, %v576_v49  ;;  %v617_v1 = vmul.f32 %v601_v24, %v577_v50 }
 0x137   :  { %v610_v48 = vmul.f32 %v602_v38, %v570_v37  ;;  %v611_v59 = vmul.f32 %v603_v42, %v571_v45 }
 0x138   :  { %v635_v13 = vadd.f32 %v617_v1, %v616_v0 }
 0x139   :  { %v625_v63 = vadd.f32 %v624_v44, %v610_v48 }
 0x13a   :  { %v495_v41 = vpop.f32.mrf.mxu2  ;;  %v509_v52 = vpop.f32.mrf.mxu3 }
 0x13b   :  { %v496_v51 = vadd.f32 %v495_v41, %v161_v19  ;;  %v510_v60 = vadd.f32 %v509_v52, %v162_v25  ;;  %v626_v12 = vadd.f32 %v625_v63, %v611_v59 }
 0x13d   :  { %v578_v2 = vmax.f32 %v496_v51, 0.0  ;;  %v579_v10 = vmax.f32 %v510_v60, 0.0 }
 0x13f   :  { %v618_v14 = vmul.f32 %v602_v38, %v578_v2  ;;  %v619_v25 = vmul.f32 %v603_v42, %v579_v10 }
 0x141   :  { %v636_v27 = vadd.f32 %v635_v13, %v618_v14 }
 0x143   :  { %v637_v36 = vadd.f32 %v636_v27, %v619_v25 }
 0x145   :  { %v521_v53 = vpop.f32.mrf.mxu0  ;;  %v535_v55 = vpop.f32.mrf.mxu1 }
 0x146   :  { %v522_v61 = vadd.f32 %v521_v53, %v163_v46  ;;  %v536_v62 = vadd.f32 %v535_v55, %v164_v47  ;;  %v645_v55 = vstv %s1063_s4 }
 0x148   :  { %v572_v3 = vmax.f32 %v522_v61, 0.0  ;;  %v573_v6 = vmax.f32 %v536_v62, 0.0 }
 0x14a   :  { %v612_v11 = vmul.f32 %v604_v54, %v572_v3  ;;  %v613_v20 = vmul.f32 %v605_v7, %v573_v6 }
 0x14c   :  { %v549_v15 = vpop.f32.mrf.mxu2  ;;  %v563_v17 = vpop.f32.mrf.mxu3  ;;  %v627_v19 = vadd.f32 %v626_v12, %v612_v11 }
 0x14d   :  { %v550_v22 = vadd.f32 %v549_v15, %v165_v8  ;;  %v564_v21 = vadd.f32 %v563_v17, %v166_v9  ;;  %v523_v23 = vpop.f32.mrf.mxu0  ;;  %v537_v24 = vpop.f32.mrf.mxu1 }
 0x14e   :  { %v524_v26 = vadd.f32 %v523_v23, %v163_v46  ;;  %v538_v30 = vadd.f32 %v537_v24, %v164_v47  ;;  %v628_v34 = vadd.f32 %v627_v19, %v613_v20 }
 0x14f   :  { %v574_v28 = vmax.f32 %v550_v22, 0.0  ;;  %v575_v29 = vmax.f32 %v564_v21, 0.0 }
 0x150   :  { %v580_v31 = vmax.f32 %v524_v26, 0.0  ;;  %v581_v37 = vmax.f32 %v538_v30, 0.0 }
 0x151   :  { %v614_v32 = vmul.f32 %v606_v16, %v574_v28  ;;  %v615_v33 = vmul.f32 %v607_v18, %v575_v29 }
 0x152   :  { %v620_v35 = vmul.f32 %v604_v54, %v580_v31  ;;  %v621_v46 = vmul.f32 %v605_v7, %v581_v37 }
 0x153   :  { %v629_v38 = vadd.f32 %v628_v34, %v614_v32  ;;  %v631_v39 = vsel %vm630_vm2, %v615_v33, 0.0 }
 0x154   :  { %v551_v40 = vpop.f32.mrf.mxu2  ;;  %v565_v41 = vpop.f32.mrf.mxu3  ;;  %v638_v43 = vadd.f32 %v637_v36, %v620_v35 }
 0x155   :  { %v552_v42 = vadd.f32 %v551_v40, %v165_v8  ;;  %v566_v44 = vadd.f32 %v565_v41, %v166_v9  ;;  %v632_v45 = vadd.f32 %v631_v39, %v629_v38 }
 0x156   :  { %v639_v49 = vadd.f32 %v638_v43, %v621_v46 }
 0x157   :  { %v582_v48 = vmax.f32 %v552_v42, 0.0  ;;  %v583_v47 = vmax.f32 %v566_v44, 0.0  ;;  %633 = vadd.xlane.f32.xlu0 %v632_v45 }
 0x159   :  { %v622_v50 = vmul.f32 %v606_v16, %v582_v48  ;;  %v623_v51 = vmul.f32 %v607_v18, %v583_v47 }
 0x15b   :  { %v640_v52 = vadd.f32 %v639_v49, %v622_v50  ;;  %v641_v53 = vsel %vm630_vm2, %v623_v51, 0.0 }
 0x15d   :  { %v642_v54 = vadd.f32 %v641_v53, %v640_v52 }
 0x15f   :  { %643 = vadd.xlane.f32.xlu0 %v642_v54 }
 0x1ca   :  { %v634_v56 = vpop.xlane.xlu0 %633 }
 0x1cb   :  { %v646_v57 = vadd.f32 %v645_v55, %v634_v56 }
 0x1cd   :  { %649 = vst.msk [vmem:[%s1064_s5] sm:$0xff] %vm648_vm3, %v646_v57 }
 0x1d2   :  { %v644_v58 = vpop.xlane.xlu0 %643 }
 0x1d3   :  { %v647_v59 = vadd.f32 %v645_v55, %v644_v58 }
 0x1d5   :  { %650 = vst.msk [vmem:[%s1064_s5 + $0x8] sm:$0xff] %vm648_vm3, %v647_v59 }
 0x1d6   :  { %655 = vsyncpa [#allocation6], 1 }
 0x1d7   :  { %656 = vsyncmov [#allocation3] }
 0x1da   :  { %s657_s13 = vpop.sfrf %656 }
 0x1db   :  { %p862_p0 = scmp.ne.s32.totalorder %s657_s13, 0 }
 0x1dd   :  { %661 = shalt.err (%p862_p0)  }

</bundles_post_ra>
